<compile_context>
chip_gen: v7x
topology: tpu7x:2x2x1
jax: 0.10.0
libtpu: 0.0.40
codegen_flags: <defaults>
</compile_context>

<pallas_src>
import jax
import jax.numpy as jnp
from jax.experimental import pallas as pl
from jax.experimental.pallas import tpu as pltpu


# ---------------------------------------------------------------------------
# Kernels
# ---------------------------------------------------------------------------

def _se_single_pass_kernel(x_ref, w1t_ref, w2t_ref, o_ref):
    """Full (C, L) rows per grid step: squeeze + FC + excite in one pass."""
    # Squeeze: f32 lane reduce.  1/L is folded into w1t (fc1 is bias-free and
    # linear), so a plain sum is the correct FC input.  Padded lanes are zero.
    y = jnp.sum(x_ref[...], axis=-1, dtype=jnp.float32)                # (TB, C)
    h = jnp.maximum(
        jnp.dot(y, w1t_ref[...], preferred_element_type=jnp.float32), 0.0)
    s = jax.nn.sigmoid(
        jnp.dot(h, w2t_ref[...], preferred_element_type=jnp.float32))  # (TB, C)
    # Excite: re-read x from VMEM (don't hold the tile live across the reduce).
    o_ref[...] = (x_ref[...] * s[:, :, None].astype(x_ref.dtype)).astype(o_ref.dtype)


def _se_scale_kernel(x_ref, w1t_ref, w2t_ref, s_ref, acc_ref):
    """Fallback phase A: accumulate the L-sum over chunks, FC on the last one."""
    l = pl.program_id(1)

    @pl.when(l == 0)
    def _():
        acc_ref[...] = jnp.zeros_like(acc_ref)

    acc_ref[...] += jnp.sum(x_ref[...], axis=-1, dtype=jnp.float32)    # (1, C)

    @pl.when(l == pl.num_programs(1) - 1)
    def _():
        y = acc_ref[...]                                               # (1, C)
        h = jnp.maximum(
            jnp.dot(y, w1t_ref[...], preferred_element_type=jnp.float32), 0.0)
        s = jax.nn.sigmoid(
            jnp.dot(h, w2t_ref[...], preferred_element_type=jnp.float32))
        s_ref[...] = s[:, None, :]                                     # (1, 1, C)


def _se_apply_kernel(x_ref, s_ref, o_ref):
    """Fallback phase B: stream x in L chunks and apply the per-row scale."""
    s = s_ref[:, 0, :]                                                 # (1, C)
    o_ref[...] = (x_ref[...] * s[:, :, None].astype(x_ref.dtype)).astype(o_ref.dtype)


# ---------------------------------------------------------------------------
# Sizing helpers
# ---------------------------------------------------------------------------

def _vmem_capacity_bytes():
    try:
        return int(pltpu.get_tpu_info().vmem_capacity_bytes)
    except Exception:
        return 64 << 20  # conservative fallback (v7x per-TC size)


def _budgets():
    """Per-generation (tile_bytes, scoped_vmem_limit_bytes).

    Budget is ~2 buffers x (in tile + out tile) + small resident weights, with
    headroom for internal scratch: v7x has 64 MiB/TC, v5e/v6e have 128 MiB.
    """
    vmem = _vmem_capacity_bytes()
    if vmem <= (64 << 20):            # v7x
        return 10 << 20, 48 << 20
    return 16 << 20, 80 << 20         # v5e / v6e


def _choose_tb(B, row_bytes, target_bytes):
    """Batch rows per grid step.  No divisibility requirement: the partial last
    block is safe because every row is independent and OOB rows are masked on
    write."""
    tb = max(1, min(B, target_bytes // max(row_bytes, 1)))
    if B >= 2:
        # Keep >= 2 grid steps so both v7x TensorCores get work; prefer an even
        # step count so megacore sharding is balanced.
        tb = min(tb, (B + 1) // 2)
        steps = pl.cdiv(B, tb)
        if steps > 1 and steps % 2 == 1:
            tb = max(1, pl.cdiv(B, steps + 1))
    return int(tb)


def _round_up(n, m):
    return pl.cdiv(n, m) * m


# ---------------------------------------------------------------------------
# Wrapper
# ---------------------------------------------------------------------------

def se_layer(x, w1, w2):
    """x: (B, C, L); w1 = fc1.weight (C//r, C); w2 = fc2.weight (C, C//r)."""
    B, C, L = x.shape
    Cr = w1.shape[0]
    itemsize = x.dtype.itemsize
    target_tile, vmem_limit = _budgets()

    # Pre-transpose weights (no in-kernel XLU transpose); fold the 1/L of the
    # mean into the bias-free, linear fc1 so the kernel only needs a lane sum.
    w1t = jnp.transpose(w1).astype(jnp.float32) * jnp.float32(1.0 / L)   # (C, Cr)
    w2t = jnp.transpose(w2).astype(jnp.float32)                          # (Cr, C)

    # Lane-dense padding: keep the last dim a multiple of 128 so the excite
    # write-back uses unmasked stores.  Zero padding keeps the (folded) mean
    # exact; padding is sliced off below.
    Lp = _round_up(L, 128)
    row_bytes = C * Lp * itemsize
    use_single_pass = row_bytes <= target_tile

    if not use_single_pass:
        # L-chunked 2-phase fallback for rows exceeding the per-gen tile budget.
        l_chunk = max(128, ((target_tile // max(C * itemsize, 1)) // 128) * 128)
        Lp = _round_up(L, l_chunk)

    x_p = x if Lp == L else jnp.pad(x, ((0, 0), (0, 0), (0, Lp - L)))

    if use_single_pass:
        tb = _choose_tb(B, row_bytes, target_tile)
        out = pl.pallas_call(
            _se_single_pass_kernel,
            out_shape=jax.ShapeDtypeStruct((B, C, Lp), x.dtype),
            grid=(pl.cdiv(B, tb),),
            in_specs=[
                pl.BlockSpec((tb, C, Lp), lambda b: (b, 0, 0)),
                pl.BlockSpec((C, Cr), lambda b: (0, 0)),   # resident weights
                pl.BlockSpec((Cr, C), lambda b: (0, 0)),   # resident weights
            ],
            out_specs=pl.BlockSpec((tb, C, Lp), lambda b: (b, 0, 0)),
            compiler_params=pltpu.CompilerParams(
                dimension_semantics=("parallel",),
                vmem_limit_bytes=vmem_limit,
            ),
        )(x_p, w1t, w2t)
    else:
        n_l = Lp // l_chunk

        # Phase A: per-(b, c) scale, accumulating the L sum across chunks.
        s = pl.pallas_call(
            _se_scale_kernel,
            out_shape=jax.ShapeDtypeStruct((B, 1, C), jnp.float32),
            grid=(B, n_l),
            in_specs=[
                pl.BlockSpec((1, C, l_chunk), lambda b, l: (b, 0, l)),
                pl.BlockSpec((C, Cr), lambda b, l: (0, 0)),
                pl.BlockSpec((Cr, C), lambda b, l: (0, 0)),
            ],
            out_specs=pl.BlockSpec((1, 1, C), lambda b, l: (b, 0, 0)),
            scratch_shapes=[pltpu.VMEM((1, C), jnp.float32)],
            compiler_params=pltpu.CompilerParams(
                dimension_semantics=("parallel", "arbitrary"),
                vmem_limit_bytes=vmem_limit,
            ),
        )(x_p, w1t, w2t)

        # Phase B: stream x in L chunks and apply the per-row scale.
        out = pl.pallas_call(
            _se_apply_kernel,
            out_shape=jax.ShapeDtypeStruct((B, C, Lp), x.dtype),
            grid=(B, n_l),
            in_specs=[
                pl.BlockSpec((1, C, l_chunk), lambda b, l: (b, 0, l)),
                pl.BlockSpec((1, 1, C), lambda b, l: (b, 0, 0)),
            ],
            out_specs=pl.BlockSpec((1, C, l_chunk), lambda b, l: (b, 0, l)),
            compiler_params=pltpu.CompilerParams(
                dimension_semantics=("parallel", "parallel"),
                vmem_limit_bytes=vmem_limit,
            ),
        )(x_p, s)

    if Lp != L:
        out = out[:, :, :L]
    return out


def se_layer_ref(x, w1, w2):
    y = jnp.mean(x, axis=-1)                       # (B, C)
    h = jnp.maximum(y @ w1.T, 0.0)                 # (B, Cr)
    s = jax.nn.sigmoid(h @ w2.T)                   # (B, C)
    return x * s[:, :, None]


if __name__ == "__main__":
    B, C, L = 2, 32, 128
    reduction = 16
    Cr = C // reduction

    key = jax.random.PRNGKey(0)
    kx, k1, k2 = jax.random.split(key, 3)
    x = jax.random.normal(kx, (B, C, L), dtype=jnp.float32)
    # PyTorch Linear weight shapes: (out_features, in_features), no bias.
    w1 = jax.random.normal(k1, (Cr, C), dtype=jnp.float32) * 0.1   # fc1.weight
    w2 = jax.random.normal(k2, (C, Cr), dtype=jnp.float32) * 0.1   # fc2.weight

    out = jax.block_until_ready(se_layer(x, w1, w2))
    ref = se_layer_ref(x, w1, w2)
    assert out.shape == (B, C, L)
    assert jnp.allclose(out, ref, atol=1e-5, rtol=1e-5)
    print("KERNEL_OK")
</pallas_src>

<mosaic_0001>
module attributes {stable_mosaic.version = 11 : i64} {
  func.func @_se_single_pass_kernel(%arg0: i32, %arg1: memref<1x32x128xf32, #tpu.memory_space<vmem>>, %arg2: memref<32x2xf32, #tpu.memory_space<vmem>>, %arg3: memref<2x32xf32, #tpu.memory_space<vmem>>, %arg4: memref<1x32x128xf32, #tpu.memory_space<vmem>>) attributes {dimension_semantics = [#tpu.dimension_semantics<parallel>], iteration_bounds = array<i64: 2>, scalar_prefetch = 0 : i64, scratch_operands = 0 : i64, tpu.core_type = #tpu.core_type<tc>, window_params = [{transform_indices = @transform_0, window_bounds = array<i64: 1, 32, 128>}, {pipeline_mode = #tpu.pipeline_mode<synchronous>, transform_indices = @transform_1, window_bounds = array<i64: 32, 2>}, {pipeline_mode = #tpu.pipeline_mode<synchronous>, transform_indices = @transform_2, window_bounds = array<i64: 2, 32>}, {transform_indices = @transform_3, window_bounds = array<i64: 1, 32, 128>}]} {
    %c0 = arith.constant 0 : index
    %c0_0 = arith.constant 0 : index
    %c0_1 = arith.constant 0 : index
    %0 = vector.load %arg1[%c0, %c0_0, %c0_1] : memref<1x32x128xf32, #tpu.memory_space<vmem>>, vector<1x32x128xf32>
    %cst = arith.constant dense<0.000000e+00> : vector<1x32xf32>
    %1 = vector.multi_reduction <add>, %0, %cst [2] : vector<1x32x128xf32> to vector<1x32xf32>
    %c0_2 = arith.constant 0 : index
    %c0_3 = arith.constant 0 : index
    %2 = vector.load %arg2[%c0_2, %c0_3] : memref<32x2xf32, #tpu.memory_space<vmem>>, vector<32x2xf32>
    %cst_4 = arith.constant dense<0.000000e+00> : vector<1x2xf32>
    %3 = tpu.matmul %1, %2, %cst_4 {dimension_numbers = #tpu.dot_dimension_numbers<[1], [0], [0], [1], [0, 0, 1, 1], [], []>} : vector<1x32xf32>, vector<32x2xf32>, vector<1x2xf32> -> vector<1x2xf32>
    %cst_5 = arith.constant 0.000000e+00 : f32
    %4 = vector.broadcast %cst_5 : f32 to vector<1x2xf32>
    %5 = arith.maximumf %3, %4 : vector<1x2xf32>
    %c0_6 = arith.constant 0 : index
    %c0_7 = arith.constant 0 : index
    %6 = vector.load %arg3[%c0_6, %c0_7] : memref<2x32xf32, #tpu.memory_space<vmem>>, vector<2x32xf32>
    %cst_8 = arith.constant dense<0.000000e+00> : vector<1x32xf32>
    %7 = tpu.matmul %5, %6, %cst_8 {dimension_numbers = #tpu.dot_dimension_numbers<[1], [0], [0], [1], [0, 0, 1, 1], [], []>} : vector<1x2xf32>, vector<2x32xf32>, vector<1x32xf32> -> vector<1x32xf32>
    %8 = arith.negf %7 : vector<1x32xf32>
    %9 = math.exp %8 : vector<1x32xf32>
    %cst_9 = arith.constant 1.000000e+00 : f32
    %10 = vector.broadcast %cst_9 : f32 to vector<1x32xf32>
    %11 = arith.addf %10, %9 : vector<1x32xf32>
    %12 = arith.divf %10, %11 : vector<1x32xf32>
    %c0_10 = arith.constant 0 : index
    %c0_11 = arith.constant 0 : index
    %c0_12 = arith.constant 0 : index
    %13 = vector.load %arg1[%c0_10, %c0_11, %c0_12] : memref<1x32x128xf32, #tpu.memory_space<vmem>>, vector<1x32x128xf32>
    %14 = vector.shape_cast %12 : vector<1x32xf32> to vector<1x32x1xf32>
    %15 = vector.broadcast %14 : vector<1x32x1xf32> to vector<1x32x128xf32>
    %16 = arith.mulf %13, %15 : vector<1x32x128xf32>
    %c0_13 = arith.constant 0 : index
    %c0_14 = arith.constant 0 : index
    %c0_15 = arith.constant 0 : index
    %17 = vector.load %arg4[%c0_13, %c0_14, %c0_15] : memref<1x32x128xf32, #tpu.memory_space<vmem>>, vector<1x32x128xf32>
    tpu.vector_store %arg4[%c0_13, %c0_14, %c0_15], %16 {strides = array<i32>} : memref<1x32x128xf32, #tpu.memory_space<vmem>>, vector<1x32x128xf32>,
    return
  }
  func.func @transform_0(%arg0: i32) -> (i32, i32, i32) {
    %c0_i32 = arith.constant 0 : i32
    %c0_i32_0 = arith.constant 0 : i32
    %c0_i32_1 = arith.constant 0 : i32
    return %arg0, %c0_i32, %c0_i32_0 : i32, i32, i32
  }
  func.func @transform_1(%arg0: i32) -> (i32, i32) {
    %c0_i32 = arith.constant 0 : i32
    %c0_i32_0 = arith.constant 0 : i32
    %c0_i32_1 = arith.constant 0 : i32
    return %c0_i32, %c0_i32_0 : i32, i32
  }
  func.func @transform_2(%arg0: i32) -> (i32, i32) {
    %c0_i32 = arith.constant 0 : i32
    %c0_i32_0 = arith.constant 0 : i32
    %c0_i32_1 = arith.constant 0 : i32
    return %c0_i32, %c0_i32_0 : i32, i32
  }
  func.func @transform_3(%arg0: i32) -> (i32, i32, i32) {
    %c0_i32 = arith.constant 0 : i32
    %c0_i32_0 = arith.constant 0 : i32
    %c0_i32_1 = arith.constant 0 : i32
    return %arg0, %c0_i32, %c0_i32_0 : i32, i32, i32
  }
}

</mosaic_0001>

<bundles_post_ra>
// kernel: tpu_custom_call.1
= control target key start
LH: loop header
LB: loop body
LE: loop exit
PB: predicated region body
PF: predicated region fallthrough
CT: control target
= control target key end

     0   :  { %8 = vsyncpa [#allocation3], 0  ;;  %s939_s0 = inlined_call_operand.hbm [shape: f32[2,32,128], index: 0, kind: input, shape index: {}]   ;;  %s940_s1 = inlined_call_operand.vmem [shape: f32[32,2], index: 1, kind: input, shape index: {}]   ;;  %s941_s2 = inlined_call_operand.vmem [shape: f32[2,32], index: 2, kind: input, shape index: {}]   ;;  %s942_s3 = inlined_call_operand.hbm [shape: f32[2,32,128], index: 3, kind: output, shape index: {}]  }
   0x1   :  { %10 = vsyncpa [#allocation3 + $0x1], 0 }
   0x2   :  { %11 = vsyncpa [#allocation4], 0 }
   0x3   :  { %13 = vsyncpa [#allocation4 + $0x1], 0  ;;  %s742_s12 = smov 0   ;;  %s744_s13 = smov 0  }
   0x4   :  { %s746_s14 = smov 0   ;;  %s748_s15 = smov 0  }
   0x5 LB: > { %s763_s16 = sadd.s32 4294967295, %s711_s15   ;;  %s509_s17 = sadd.s32 4294967294, %s711_s15   ;;  %s711_s15 = sphi %s748_s15, %s955_s15   ;;  %s707_s14 = sphi %s746_s14, %s954_s14   ;;  %s703_s13 = sphi %s744_s13, %s953_s13   ;;  %s699_s12 = sphi %s742_s12, %s952_s12  }
   0x6   : > { %s767_s18 = sadd.s32 1, %s711_s15   ;;  %s26_s19 = sadd.s32 1, %s707_s14 }
   0x7   : > { %s23_s20 = ssub.s32 %s711_s15, %s767_s18  ;;  %p33_p0 = scmp.ne.s32.totalorder %s707_s14, %s703_s13 }
   0x8   : > { %p24_p1 = scmp.eq.s32.totalorder %s23_s20, 0  ;;  %p34_p2 = scmp.eq.s32.totalorder %s711_s15, 0 }
   0x9   : > { %p39_p3 = scmp.ne.s32.totalorder %s703_s13, %s699_s12  ;;  %p40_p4 = scmp.eq.s32.totalorder %s763_s16, 0 }
   0xa   : > { %s779_s21 = scalar_select %p24_p1, %s707_s14, %s26_s19  }
   0xb   : > { %p781_p5 = por %p34_p2, %p33_p0  ;;  %p785_p6 = por %p40_p4, %p39_p3 }
   0xc   : > { %p105_p7 = scmp.eq.s32.totalorder %s763_s16, 1  ;;  %p111_p8 = scmp.eq.s32.totalorder %s509_s17, 1 }
   0xd   : > { %p570_p10 = scmp.lt.s32.totalorder %s711_s15, 2  ;;  %s137_s26 = sand.u32 1, %s707_s14  }
   0xe   : > { %p792_p11 = por %p105_p7, %p33_p0  ;;  %p796_p12 = por %p111_p8, %p39_p3 }
   0xf   : > { %s527_s27 = sshll.u32 %s711_s15, 9  ;;  %s512_s28 = sshll.u32 %s137_s26, 5 }
  0x10   : > { %s946_s24 = scalar_select %p792_p11, 1, 0 }
  0x11   : > { %s947_s25 = scalar_select %p796_p12, 1, 0 }
  0x12   : > { %s805_s4 = scalar_lea.hbm %s939_s0, %s527_s27  ;;  %s141_s5 = scalar_lea.vmem [#allocation2], %s512_s28 }
  0x13   : > { %s148_s6 = sshll.u32 %s141_s5, 4  ;;  %p809_p13 = pnand %p570_p10, %p781_p5  ;;  %s813_s6 = int_to_ptr.vmem [resolvable:$true] %s148_s6 }
  0x14   : > { %s815_s8 = scalar_lea.sflag [#allocation3], %s137_s26  ;;  %s615_s9 = scalar_lea.hbm %s805_s4, 512 }
  0x15   : > { %p616_p0 = scmp.ne.s32.totalorder %s805_s4, %s615_s9  ;;  %p617_p1 = pneg %p809_p13 }
  0x16   : > { %s620_s17 = scalar_lea.hbm %s939_s0, 1024  ;;  %p621_p4 = scmp.lt.u32.totalorder %s805_s4, %s939_s0 }
  0x17   : > { %p618_p2 = pnand %p617_p1, %p616_p0  ;;  %p622_p5 = scmp.lt.u32.totalorder %s620_s17, %s615_s9 }
  0x18   : > { %p624_p8 = scmp.lt.u32.totalorder %s615_s9, %s805_s4 }
  0x19   : > { %p619_p3 = pneg %p618_p2  ;;  %p623_p7 = por %p622_p5, %p621_p4 }
  0x1b   : > { %p625_p10 = por %p624_p8, %p623_p7 }
  0x1d   : > { %p626_p9 = pnand %p625_p10, %p619_p3 }
  0x1f   : > { %629 = shalt.err (!%p626_p9)
}
  0x20   : > { %s630_s22 = scalar_lea.vmem %s813_s6, 512  ;;  %s713_s26 = smov [#allocation2]  }
  0x21   : > { %p631_p0 = scmp.ne.s32.totalorder %s813_s6, %s630_s22  ;;  %s635_s27 = sshll.u32 %s713_s26, 4  ;;  %s636_s27 = int_to_ptr.vmem [resolvable:$false] %s635_s27 }
  0x22   : > { %s637_s28 = scalar_lea.vmem %s636_s27, 1024  ;;  %p638_p11 = scmp.lt.s32.totalorder %s813_s6, %s636_s27 }
  0x23   : > { %p633_p2 = pnand %p631_p0, %p617_p1  ;;  %p639_p4 = scmp.lt.s32.totalorder %s637_s28, %s630_s22 }
  0x25   : > { %p634_p12 = pneg %p633_p2  ;;  %p640_p5 = por %p639_p4, %p638_p11 }
  0x27   : > { %p641_p7 = pnand %p640_p5, %p634_p12 }
  0x29   : > { %644 = shalt.err (!%p641_p7)
}
  0x2a   : > { %s714_s29 = smov 128   ;;  %s715_s30 = smov 8  }
  0x2b   : > { %565 = dma.hbm_to_vmem [thread:$0]  (!%p809_p13), %s805_s4, 512, %s813_s6, %s815_s8, %s714_s29, %s714_s29, %s715_s30  }
  0x2c   : > { %p515_p9 = scmp.ge.s32.totalorder %s711_s15, 1  ;;  %p156_p1 = scmp.lt.s32.totalorder %s711_s15, 3 }
  0x2e   : > { %p157_p3 = pnand %p515_p9, %p156_p1 }
  0x2f   : > { %s846_s5 = sand.u32 (!%p157_p3), 1, %s703_s13  }
  0x30   : > { %160 = sbr.rel (%p157_p3) target bundleno = 802 (0x322), region = 32  ;;  %s516_s9 = sshll.u32 (!%p157_p3), %s846_s5, 5 }
  0x31   : > { %s163_s10 = scalar_lea.sflag (!%p157_p3), [#allocation3], %s846_s5  ;;  %s166_s11 = scalar_lea.vmem (!%p157_p3), [#allocation2], %s516_s9 }
  0x37   : > { %690 = dma.done.wait (%p785_p6), %s163_s10, 512  }
  0x38   : > { %692 = vsyncadd (%p785_p6), %s163_s10, 4294966784  ;;  %v856_v0 = vld [vmem:[%s166_s11] sm:$0xff]  ;;  %v858_v1 = vld [vmem:[%s166_s11 + $0x10] sm:$0xff]  ;;  %v716_v7 = vmov 0.0|0.0   ;;  %vm717_vm0 = vmmov 0   ;;  %v718_v11 = vmov 0.0   ;;  %v209_v12 = vlaneseq }
  0x39   : > { %193 = vadd.xlane.f32.xlu0 %v856_v0  ;;  %197 = vadd.xlane.f32.xlu1 %v858_v1  ;;  %v862_v2 = vld [vmem:[%s166_s11 + $0x8] sm:$0xff]  ;;  %v864_v3 = vld [vmem:[%s166_s11 + $0x18] sm:$0xff]  ;;  %v201_v4 = vld [vmem:[%s940_s1] sm:$0xff]  ;;  %vm220_vm1 = vcmask 130112   ;;  %vm227_vm2 = vcmask 195712   ;;  %vm234_vm3 = vcmask 261312  }
  0x3a   : > { %v202_v5 = vld [vmem:[%s940_s1 + $0x8] sm:$0xff]  ;;  %552 = vmatprep.subr.bf16.mxu0 %v716_v7  ;;  %v203_v8 = vld [vmem:[%s940_s1 + $0x10] sm:$0xff]  ;;  %v204_v9 = vld [vmem:[%s940_s1 + $0x18] sm:$0xff]  ;;  %544 = vmatprep.mubr.msk.f32.mxu0 %vm717_vm0, %v718_v11  ;;  %v210_v13 = vand.u32 127, %v209_v12  ;;  %v212_v14 = vshrl.u32 %v209_v12, 7  ;;  %vm236_vm4 = vcmask 261120  }
  0x3b   : > { %v553_v6 = vpack.c.bf16 %v202_v5, %v201_v4  ;;  %v556_v10 = vpack.c.bf16 %v204_v9, %v203_v8  ;;  %547 = vmatprep.subr.mxu1 %v718_v11  ;;  %549 = vmatprep.mubr.msk.f32.mxu1 %vm717_vm0, %v718_v11  ;;  %v310_v33 = vld [vmem:[%s941_s2] sm:$0x3]  ;;  %vm315_vm5 = vcmask 1041408   ;;  %vm311_vm6 = vcmask 15360   ;;  %s188_s27 = scalar_lea.vmem [#allocation5], %s516_s9  ;;  %s528_s29 = sshll.u32 %s763_s16, 9 }
  0x3c   : > { %v215_v15 = vadd.s32 4294967288, %v210_v13  ;;  %v229_v16 = vadd.s32 4294967272, %v210_v13  ;;  %v222_v17 = vadd.s32 4294967280, %v210_v13  ;;  %v213_v20 = vsub.s32 %v210_v13, %v212_v14  ;;  %548 = vmatpush3.msk.msra.mxu1 %vm315_vm5, %v310_v33  ;;  %s436_s28 = sshll.u32 %s188_s27, 4  ;;  %s894_s11 = scalar_lea.hbm %s942_s3, %s528_s29  ;;  %s889_s28 = int_to_ptr.vmem [resolvable:$true] %s436_s28 }
  0x3d   : > { %195 = vadd.xlane.f32.xlu0 %v862_v2  ;;  %199 = vadd.xlane.f32.xlu1 %v864_v3  ;;  %v397_v42 = vsub.s32 0, %v212_v14  ;;  %s423_s9 = scalar_lea.sflag [#allocation4], %s846_s5  ;;  %s645_s4 = scalar_lea.vmem %s889_s28, 512 }
  0x3e   : > { %554 = vmatpush3.bf16.msra.mxu0 %v553_v6  ;;  %v218_v21 = vsub.s32 %v215_v15, %v212_v14  ;;  %v232_v22 = vsub.s32 %v229_v16, %v212_v14  ;;  %v225_v23 = vsub.s32 %v222_v17, %v212_v14  ;;  %p646_p6 = scmp.ne.s32.totalorder %s889_s28, %s645_s4  ;;  %p949_p11 = scmp.ne.s32.totalorder %s946_s24, 0 }
  0x3f   : > { %555 = vmatprep.subr.bf16.mxu0 %v716_v7  ;;  %s719_s16 = smov [#allocation5]  }
  0x40   : > { %p647_p12 = pnand %p646_p6, %p949_p11  ;;  %s649_s6 = sshll.u32 %s719_s16, 4  ;;  %s650_s6 = int_to_ptr.vmem [resolvable:$false] %s649_s6 }
  0x41   : > { %s651_s23 = scalar_lea.vmem %s650_s6, 1024  ;;  %p652_p8 = scmp.lt.s32.totalorder %s889_s28, %s650_s6 }
  0x42   : > { %557 = vmatpush3.bf16.msra.mxu0 %v556_v10  ;;  %p648_p13 = pneg %p647_p12  ;;  %p653_p10 = scmp.lt.s32.totalorder %s651_s23, %s645_s4 }
  0x44   : > { %p654_p0 = por %p653_p10, %p652_p8 }
  0x46   : > { %p655_p2 = pnand %p654_p0, %p648_p13 }
  0xc6   : > { %v194_v18 = vpop.xlane.xlu0 %193  ;;  %v198_v19 = vpop.xlane.xlu1 %197 }
  0xc7   : > { %v214_v26 = vrot.slane %v194_v18, %v213_v20  ;;  %v226_v29 = vrot.slane %v198_v19, %v225_v23 }
  0xca   : > { %v196_v24 = vpop.xlane.xlu0 %195  ;;  %v200_v25 = vpop.xlane.xlu1 %199 }
  0xcb   : > { %v219_v27 = vrot.slane %v196_v24, %v218_v21  ;;  %v233_v28 = vrot.slane %v200_v25, %v232_v22 }
  0xcd   : > { %v221_v30 = vsel %vm220_vm1, %v219_v27, %v214_v26 }
  0xce   : > { %v228_v31 = vsel %vm227_vm2, %v226_v29, %v221_v30 }
  0xcf   : > { %v235_v32 = vsel %vm234_vm3, %v233_v28, %v228_v31 }
  0xd0   : > { %545 = vmatmul.mubr.msk.f32.vlgmr.msra.gmra.mrb[0].mxu0 %vm236_vm4, %v235_v32 }
 0x1a3   : > { %v305_v34 = vpop.f32.mrb[0].mxu0 }
 0x1a4   : > { %v309_v35 = vmax.f32 %v305_v34, 0.0  ;;  %v546_v36 = vpop.f32.mrb[1].mxu0 }
 0x1a6   : > { %550 = vmatmul.mubr.msk.f32.vlgmr.msra.gmra.mrb[0].mxu1 %vm311_vm6, %v309_v35 }
 0x279   : > { %v385_v37 = vpop.f32.mrb[0].mxu1 }
 0x27a   : > { %v521_v38 = vmul.f32 -1.442695, %v385_v37  ;;  %v551_v39 = vpop.f32.mrb[1].mxu1 }
 0x27c   : > { %611 = vpow2.f32 %v521_v38 }
 0x286   : > { %v612_v40 = vpop.eup %611 }
 0x287   : > { %v392_v41 = vadd.f32 1.0, %v612_v40 }
 0x289   : > { %613 = vrcp.f32 %v392_v41 }
 0x293   : > { %v614_v43 = vpop.eup %613 }
 0x294   : > { %v398_v44 = vrot.slane %v614_v43, %v397_v42 }
 0x296   : > { %404 = vbcast.lane.b32.xlu1 %v398_v44, 264  ;;  %400 = vbcast.lane.b32.xlu0 %v398_v44, 256 }
 0x29a   : > { %408 = vbcast.lane.b32.xlu1 %v398_v44, 272 }
 0x29e   : > { %412 = vbcast.lane.b32.xlu1 %v398_v44, 280 }
 0x308   : > { %v405_v45 = vpop.permute.xlu1 %404  ;;  %v401_v46 = vpop.permute.xlu0 %400 }
 0x309   : > { %v415_v47 = vmul.f32 %v405_v45, %v862_v2  ;;  %v414_v48 = vmul.f32 %v401_v46, %v856_v0 }
 0x30b   : > { %419 = vst [vmem:[%s188_s27 + $0x8] sm:$0xff] %v415_v47  ;;  %418 = vst [vmem:[%s188_s27] sm:$0xff] %v414_v48 }
 0x30c   : > { %v409_v49 = vpop.permute.xlu1 %408 }
 0x30d   : > { %v416_v50 = vmul.f32 %v409_v49, %v858_v1 }
 0x30f   : > { %420 = vst [vmem:[%s188_s27 + $0x10] sm:$0xff] %v416_v50 }
 0x310   : > { %v413_v51 = vpop.permute.xlu1 %412 }
 0x311   : > { %v417_v52 = vmul.f32 %v413_v51, %v864_v3 }
 0x313   : > { %421 = vst [vmem:[%s188_s27 + $0x18] sm:$0xff] %v417_v52 }
 0x314   : > { %658 = shalt.err (!%p655_p2)
}
 0x315   : > { %s659_s7 = scalar_lea.hbm %s894_s11, 512  ;;  %s663_s19 = scalar_lea.hbm %s942_s3, 1024 }
 0x316   : > { %p660_p4 = scmp.ne.s32.totalorder %s894_s11, %s659_s7  ;;  %p664_p9 = scmp.lt.u32.totalorder %s894_s11, %s942_s3 }
 0x317   : > { %p665_p1 = scmp.lt.u32.totalorder %s663_s19, %s659_s7  ;;  %p667_p6 = scmp.lt.u32.totalorder %s659_s7, %s894_s11 }
 0x318   : > { %p661_p5 = pnand %p660_p4, %p949_p11 }
 0x319   : > { %p666_p3 = por %p665_p1, %p664_p9 }
 0x31a   : > { %p662_p7 = pneg %p661_p5 }
 0x31b   : > { %p668_p12 = por %p667_p6, %p666_p3 }
 0x31d   : > { %p669_p13 = pnand %p668_p12, %p662_p7 }
 0x31f   : > { %672 = shalt.err (!%p669_p13)
}
 0x320   : > { %s720_s26 = smov 128   ;;  %s721_s27 = smov 8  }
 0x321   : > { %560 = dma.vmem_to_hbm [thread:$0]  (%p949_p11), %s889_s28, 512, %s894_s11, %s423_s9, %s720_s26, %s720_s26, %s721_s27  }
 0x322 PF: > { %s451_s29 = sand.u32 1, %s699_s12   ;;  %p950_p8 = scmp.ne.s32.totalorder %s947_s25, 0 }
 0x323   : > { %p951_p10 = scmp.ge.s32.totalorder %s711_s15, 2  ;;  %s452_s30 = scalar_lea.sflag [#allocation4], %s451_s29 }
 0x325   : > { %p567_p0 = pnand %p951_p10, %p950_p8 }
 0x327   : > { %694 = dma.done.wait (!%p567_p0), %s452_s30, 512  }
 0x328   : > { %696 = vsyncadd (!%p567_p0), %s452_s30, 4294966784  ;;  %p16_p2 = scmp.ge.s32.totalorder %s767_s18, 4   ;;  %s952_s12 = smov %s703_s13 }
 0x329   : > { %s953_s13 = smov %s707_s14  ;;  %s954_s14 = smov %s779_s21 }
 0x32a   : > { %s955_s15 = smov %s767_s18  ;;  %18 = sbr.rel (!%p16_p2) target bundleno = 5 (0x5), region = 77 }
 0x331   :  { %457 = vsyncpa [#allocation3], 1 }
 0x332   :  { %459 = vsyncpa [#allocation3 + $0x1], 1 }
 0x333   :  { %460 = vsyncpa [#allocation4], 1 }
 0x334   :  { %462 = vsyncpa [#allocation4 + $0x1], 1 }

</bundles_post_ra>
